<compile_context>
chip_gen: v5e
topology: v5e:2x2
jax: 0.10.0
libtpu: 0.0.40
codegen_flags: <defaults>
</compile_context>

<pallas_src>
import functools

import jax
import jax.numpy as jnp
from jax.experimental import pallas as pl
from jax.experimental.pallas import tpu as pltpu


def _round_up(n, m):
    return ((n + m - 1) // m) * m


def golu_linear_kernel(w_ref, b_ref, x_ref, o_ref):
    # w_ref: (OUT, IN)  b_ref: (OUT, 1)  x_ref: (IN, TB)  o_ref: (OUT, TB)
    z = jnp.dot(w_ref[...], x_ref[...],
                preferred_element_type=jnp.float32) + b_ref[...]
    # GoLU: z * gompertz(z), gompertz(z) = exp(-exp(-z)) (alpha=beta=gamma=1)
    gate = jnp.exp(-jnp.exp(-z))
    o_ref[...] = (z * gate).astype(o_ref.dtype)


@functools.partial(jax.jit, static_argnames=("tile_b",))
def golu_net(x, W, b, *, tile_b=512):
    """x: (B, IN) f32; W: (OUT, IN) (PyTorch nn.Linear layout); b: (OUT,)."""
    B, IN = x.shape
    OUT = W.shape[0]

    # Lane tile for the batch axis: multiple of 128, capped at `tile_b`.
    tb = min(_round_up(tile_b, 128), _round_up(B, 128))
    B_pad = _round_up(B, tb)

    # Lane-dense layout: batch on the lane (last) dim. Pure layout plumbing,
    # fused by XLA around the kernel.
    x_t = jnp.pad(x.T, ((0, 0), (0, B_pad - B)))   # (IN, B_pad)
    b2d = b.reshape(OUT, 1)

    out_t = pl.pallas_call(
        golu_linear_kernel,
        out_shape=jax.ShapeDtypeStruct((OUT, B_pad), x.dtype),
        grid_spec=pltpu.PrefetchScalarGridSpec(
            num_scalar_prefetch=0,
            grid=(B_pad // tb,),
            in_specs=[
                pl.BlockSpec((OUT, IN), lambda i: (0, 0)),  # W resident in VMEM
                pl.BlockSpec((OUT, 1), lambda i: (0, 0)),   # b resident in VMEM
                pl.BlockSpec((IN, tb), lambda i: (0, i)),   # x batch tile (lanes)
            ],
            out_specs=pl.BlockSpec((OUT, tb), lambda i: (0, i)),
        ),
        compiler_params=pltpu.CompilerParams(
            dimension_semantics=("parallel",)),
    )(W, b2d, x_t)

    # Back to PyTorch (B, OUT) layout; drop batch padding.
    return out_t[:, :B].T


if __name__ == "__main__":
    key = jax.random.PRNGKey(0)
    k_x, k_w, k_b = jax.random.split(key, 3)

    B, IN, OUT = 8, 10, 10

    # Deterministic parameter init mimicking nn.Linear: U(-1/sqrt(in), 1/sqrt(in))
    bound = 1.0 / (IN ** 0.5)
    W = jax.random.uniform(k_w, (OUT, IN), jnp.float32, -bound, bound)  # (out, in)
    b = jax.random.uniform(k_b, (OUT,), jnp.float32, -bound, bound)
    x = jax.random.normal(k_x, (B, IN), jnp.float32)

    out = golu_net(x, W, b)
    out = jax.block_until_ready(out)

    # Pure-JAX reference check
    z_ref = x @ W.T + b
    ref = z_ref * jnp.exp(-jnp.exp(-z_ref))
    assert out.shape == (B, OUT)
    assert jnp.allclose(out, ref, atol=1e-5, rtol=1e-5), "mismatch vs reference"

    print("KERNEL_OK")
</pallas_src>

<mosaic_0001>
module attributes {stable_mosaic.version = 11 : i64} {
  func.func @golu_linear_kernel(%arg0: i32, %arg1: memref<10x10xf32, #tpu.memory_space<vmem>>, %arg2: memref<10x1xf32, #tpu.memory_space<vmem>>, %arg3: memref<10x128xf32, #tpu.memory_space<vmem>>, %arg4: memref<10x128xf32, #tpu.memory_space<vmem>>) attributes {dimension_semantics = [#tpu.dimension_semantics<parallel>], iteration_bounds = array<i64: 1>, scalar_prefetch = 0 : i64, scratch_operands = 0 : i64, tpu.core_type = #tpu.core_type<tc>, window_params = [{pipeline_mode = #tpu.pipeline_mode<synchronous>, transform_indices = @transform_0, window_bounds = array<i64: 10, 10>}, {pipeline_mode = #tpu.pipeline_mode<synchronous>, transform_indices = @transform_1, window_bounds = array<i64: 10, 1>}, {transform_indices = @transform_2, window_bounds = array<i64: 10, 128>}, {transform_indices = @transform_3, window_bounds = array<i64: 10, 128>}]} {
    %c0 = arith.constant 0 : index
    %c0_0 = arith.constant 0 : index
    %0 = vector.load %arg1[%c0, %c0_0] : memref<10x10xf32, #tpu.memory_space<vmem>>, vector<10x10xf32>
    %c0_1 = arith.constant 0 : index
    %c0_2 = arith.constant 0 : index
    %1 = vector.load %arg3[%c0_1, %c0_2] : memref<10x128xf32, #tpu.memory_space<vmem>>, vector<10x128xf32>
    %cst = arith.constant dense<0.000000e+00> : vector<10x128xf32>
    %2 = tpu.matmul %0, %1, %cst {dimension_numbers = #tpu.dot_dimension_numbers<[1], [0], [0], [1], [0, 0, 1, 1], [], []>} : vector<10x10xf32>, vector<10x128xf32>, vector<10x128xf32> -> vector<10x128xf32>
    %c0_3 = arith.constant 0 : index
    %c0_4 = arith.constant 0 : index
    %3 = vector.load %arg2[%c0_3, %c0_4] : memref<10x1xf32, #tpu.memory_space<vmem>>, vector<10x1xf32>
    %4 = vector.broadcast %3 : vector<10x1xf32> to vector<10x128xf32>
    %5 = arith.addf %2, %4 : vector<10x128xf32>
    %cst_5 = arith.constant 0.000000e+00 : f32
    %6 = vector.broadcast %cst_5 : f32 to vector<10x128xf32>
    %7 = arith.subf %6, %5 : vector<10x128xf32>
    %8 = math.exp %7 : vector<10x128xf32>
    %cst_6 = arith.constant 0.000000e+00 : f32
    %9 = vector.broadcast %cst_6 : f32 to vector<10x128xf32>
    %10 = arith.subf %9, %8 : vector<10x128xf32>
    %11 = math.exp %10 : vector<10x128xf32>
    %12 = arith.mulf %5, %11 : vector<10x128xf32>
    %c0_7 = arith.constant 0 : index
    %c0_8 = arith.constant 0 : index
    %13 = vector.load %arg4[%c0_7, %c0_8] : memref<10x128xf32, #tpu.memory_space<vmem>>, vector<10x128xf32>
    tpu.vector_store %arg4[%c0_7, %c0_8], %12 {strides = array<i32>} : memref<10x128xf32, #tpu.memory_space<vmem>>, vector<10x128xf32>,
    return
  }
  func.func @transform_0(%arg0: i32) -> (i32, i32) {
    %c0_i32 = arith.constant 0 : i32
    %c0_i32_0 = arith.constant 0 : i32
    %c0_i32_1 = arith.constant 0 : i32
    return %c0_i32, %c0_i32_0 : i32, i32
  }
  func.func @transform_1(%arg0: i32) -> (i32, i32) {
    %c0_i32 = arith.constant 0 : i32
    %c0_i32_0 = arith.constant 0 : i32
    %c0_i32_1 = arith.constant 0 : i32
    return %c0_i32, %c0_i32_0 : i32, i32
  }
  func.func @transform_2(%arg0: i32) -> (i32, i32) {
    %c0_i32 = arith.constant 0 : i32
    %c0_i32_0 = arith.constant 0 : i32
    return %c0_i32, %arg0 : i32, i32
  }
  func.func @transform_3(%arg0: i32) -> (i32, i32) {
    %c0_i32 = arith.constant 0 : i32
    %c0_i32_0 = arith.constant 0 : i32
    return %c0_i32, %arg0 : i32, i32
  }
}

</mosaic_0001>

<bundles_post_ra>
// kernel: golu_net.1
= control target key start
LH: loop header
LB: loop body
LE: loop exit
PB: predicated region body
PF: predicated region fallthrough
CT: control target
= control target key end

     0   :  { %vm37_vm0 = vcmask 1041408   ;;  %v99_v0 = vmov 0   ;;  %vm30_vm1 = vcmask 80896   ;;  %s144_s2 = inlined_call_operand.vmem [shape: f32[10,128], index: 2, kind: input, shape index: {}]   ;;  %s145_s1 = inlined_call_operand.vmem [shape: f32[10,1], index: 1, kind: input, shape index: {}]   ;;  %s146_s0 = inlined_call_operand.vmem [shape: f32[10,10], index: 0, kind: input, shape index: {}]   ;;  %s147_s3 = inlined_call_operand.vmem [shape: f32[10,128], index: 3, kind: output, shape index: {}]  }
   0x1   :  { %90 = vset.pattern.permute.xlu0 %v99_v0  ;;  %v17_v1 = vld [vmem:[%s144_s2 + $0x8] sm:$0x3]  ;;  %v18_v2 = vld [vmem:[%s145_s1] sm:$0xff] }
   0x2   :  { %v16_v3 = vld [vmem:[%s144_s2] sm:$0xff]  ;;  %84 = vmatpush.msk.msra.mxu0 %vm37_vm0, %v17_v1  ;;  %87 = vmatpush.msk.msra.mxu1 %vm37_vm0, %v17_v1  ;;  %v15_v5 = vld [vmem:[%s146_s0 + $0x8] sm:$0x3] }
   0x3   :  { %v14_v4 = vld [vmem:[%s146_s0] sm:$0xff]  ;;  %22 = vperm.xlu0 %90, %v18_v2   ;;  %v19_v6 = vld [vmem:[%s145_s1 + $0x8] sm:$0x3] }
   0x4   :  { %56 = vmatpush.msra.mxu0 %v16_v3  ;;  %88 = vmatpush.msra.mxu1 %v16_v3 }
   0x5   :  { %85 = vmatmul.msk.f32.vlgmr.msra.gmra.mxu0 %vm30_vm1, %v14_v4  ;;  %86 = vmatmul.msk.f32.vlgmr.msra.gmra.mxu1 %vm30_vm1, %v15_v5 }
   0xb   :  { %27 = vperm.xlu0 %90, %v19_v6  }
  0x75   :  { %v23_v7 = vpop.permute.xlu0 %22 }
  0x7d   :  { %v28_v8 = vpop.permute.xlu0 %27 }
  0x82   :  { %v58_v9 = vpop.f32.mrf.mxu0  ;;  %v61_v10 = vpop.f32.mrf.mxu1 }
  0x83   :  { %v59_v11 = vadd.f32 %v58_v9, %v23_v7  ;;  %v62_v12 = vadd.f32 %v61_v10, %v28_v8 }
  0x85   :  { %v64_v13 = vsub.f32 0.0, %v59_v11  ;;  %v65_v14 = vsub.f32 0.0, %v62_v12 }
  0x87   :  { %v66_v15 = vmul.f32 1.442695, %v64_v13  ;;  %v68_v16 = vmul.f32 1.442695, %v65_v14 }
  0x89   :  { %91 = vpow2.f32 %v66_v15 }
  0x8a   :  { %93 = vpow2.f32 %v68_v16 }
  0x8f   :  { %v92_v17 = vpop.eup %91 }
  0x90   :  { %v94_v18 = vpop.eup %93  ;;  %v70_v19 = vsub.f32 0.0, %v92_v17 }
  0x91   :  { %v71_v20 = vsub.f32 0.0, %v94_v18 }
  0x92   :  { %v72_v21 = vmul.f32 1.442695, %v70_v19 }
  0x93   :  { %v74_v22 = vmul.f32 1.442695, %v71_v20 }
  0x94   :  { %95 = vpow2.f32 %v72_v21 }
  0x95   :  { %97 = vpow2.f32 %v74_v22 }
  0x9a   :  { %v96_v23 = vpop.eup %95 }
  0x9b   :  { %v98_v24 = vpop.eup %97  ;;  %v76_v25 = vmul.f32 %v96_v23, %v59_v11 }
  0x9c   :  { %v77_v26 = vmul.f32 %v98_v24, %v62_v12 }
  0x9d   :  { %78 = vst [vmem:[%s147_s3] sm:$0xff] %v76_v25 }
  0x9e   :  { %79 = vst [vmem:[%s147_s3 + $0x8] sm:$0x3] %v77_v26 }

</bundles_post_ra>
